<compile_context>
chip_gen: v5e
topology: v5e:2x2
jax: 0.10.0
libtpu: 0.0.40
codegen_flags: <defaults>
</compile_context>

<pallas_src>
import jax
import jax.numpy as jnp
from jax.experimental import pallas as pl
from jax.experimental.pallas import tpu as pltpu


# ---------------------------------------------------------------------------
# Kernel: fused 1x1 conv (channel contraction) + bias + sigmoid, NCHW-native.
# Block shapes:  x (1, Cin, ts) | w (Cout_p, Cin) | b (Cout_p, 1) | o (1, Cout_p, ts)
# ---------------------------------------------------------------------------
def _conv1x1_sigmoid_kernel(x_ref, w_ref, b_ref, o_ref):
    x = x_ref[0]                                           # (Cin, ts)
    # (Cout_p, Cin) @ (Cin, ts) on the MXU, f32 accumulate; spatial stays on lanes.
    y = jnp.dot(w_ref[...], x, preferred_element_type=jnp.float32)
    y = y + b_ref[...]                                     # (Cout_p, 1) lane-broadcast
    # exp rides the EUP slot; full-precision divide keeps ~1e-6 match with the
    # f32 reference (kernel is HBM-bound, so the extra VALU work is hidden).
    o_ref[0] = (1.0 / (1.0 + jnp.exp(-y))).astype(o_ref.dtype)


# ---------------------------------------------------------------------------
# One-time parameter packing (hoisted out of the forward path).
# ---------------------------------------------------------------------------
def pack_params(w, b):
    """Pack PyTorch Conv2d(k=1) params for the kernel.  Call ONCE at init.

    w: (n_labels, Cin, 1, 1), b: (n_labels,)
    Returns weight (Cout_p, Cin) and bias (Cout_p, 1), Cout_p = n_labels rounded
    up to a multiple of 8 sublanes (padded rows are zero and sliced off later).
    """
    n_labels, cin = int(w.shape[0]), int(w.shape[1])
    cout_p = ((n_labels + 7) // 8) * 8
    w_p = jnp.zeros((cout_p, cin), jnp.float32)
    w_p = w_p.at[:n_labels, :].set(w.reshape(n_labels, cin).astype(jnp.float32))
    b_p = jnp.zeros((cout_p, 1), jnp.float32)
    b_p = b_p.at[:n_labels, 0].set(b.astype(jnp.float32))
    return {"w": w_p, "b": b_p, "n_labels": n_labels}


def _pick_spatial_tile(hw, n_batch, *, target=8192, min_steps=4):
    """Largest spatial tile that (a) divides hw, (b) is a multiple of 128 (or the
    full extent), (c) keeps total grid steps >= min_steps when possible."""
    if hw % 128 != 0:
        return hw                                  # full-extent block is always legal
    divs = [d for d in range(128, hw + 1, 128) if hw % d == 0]
    cand = [d for d in divs if d <= target]
    ts = max(cand) if cand else 128
    # Keep enough grid steps for pipelining / the v7x 2-TC split.
    while n_batch * (hw // ts) < min_steps:
        smaller = [d for d in divs if d < ts]
        if not smaller:
            break
        ts = max(smaller)
    return ts


# ---------------------------------------------------------------------------
# Forward: takes the pre-packed params (NCHW in / NCHW out, no transposes).
# ---------------------------------------------------------------------------
def output_transition_forward(packed, x, *, ts_target=8192):
    """sigmoid(Conv2d(inChans, n_labels, k=1)(x)) for x in NCHW."""
    N, Cin, H, W = x.shape
    HW = H * W
    w_p, b_p = packed["w"], packed["b"]
    n_labels = packed["n_labels"]
    cout_p = w_p.shape[0]
    assert w_p.shape[1] == Cin

    ts = _pick_spatial_tile(HW, N, target=ts_target)
    grid = (N, HW // ts)

    x3 = x.reshape(N, Cin, HW)                     # free view of contiguous NCHW

    y = pl.pallas_call(
        _conv1x1_sigmoid_kernel,
        out_shape=jax.ShapeDtypeStruct((N, cout_p, HW), jnp.float32),
        grid=grid,
        in_specs=[
            pl.BlockSpec((1, Cin, ts), lambda n, s: (n, 0, s)),   # activation slab
            pl.BlockSpec((cout_p, Cin), lambda n, s: (0, 0)),     # 1x1 conv weight
            pl.BlockSpec((cout_p, 1), lambda n, s: (0, 0)),       # bias column
        ],
        out_specs=pl.BlockSpec((1, cout_p, ts), lambda n, s: (n, 0, s)),
        compiler_params=pltpu.CompilerParams(
            dimension_semantics=("parallel", "parallel")),
    )(x3, w_p, b_p)

    if cout_p != n_labels:
        y = y[:, :n_labels, :]                     # drop the sublane pad channels
    return y.reshape(N, n_labels, H, W)


# ---------------------------------------------------------------------------
# Pure-JAX reference (for correctness check)
# ---------------------------------------------------------------------------
def reference_forward(params, x):
    w = params["w"][:, :, 0, 0]                    # (n_labels, Cin)
    b = params["b"]
    y = jnp.einsum("nchw,oc->nohw", x, w) + b[None, :, None, None]
    return jax.nn.sigmoid(y)


if __name__ == "__main__":
    key = jax.random.PRNGKey(0)
    k_w, k_b, k_x = jax.random.split(key, 3)

    # OutputTransition(inChans=32, n_labels=4) on a small feature map.
    N, Cin, H, W = 2, 32, 16, 16
    n_labels = 4

    params = dict(
        w=0.1 * jax.random.normal(k_w, (n_labels, Cin, 1, 1), jnp.float32),
        b=0.1 * jax.random.normal(k_b, (n_labels,), jnp.float32),
    )
    x = jax.random.normal(k_x, (N, Cin, H, W), jnp.float32)

    packed = pack_params(params["w"], params["b"])   # hoisted: pack once at init

    out = output_transition_forward(packed, x)
    out = jax.block_until_ready(out)
    assert out.shape == (N, n_labels, H, W), out.shape

    ref = reference_forward(params, x)
    assert jnp.allclose(out, ref, atol=1e-5, rtol=1e-5), float(
        jnp.max(jnp.abs(out - ref)))

    print("KERNEL_OK")
</pallas_src>

<mosaic_0001>
module attributes {stable_mosaic.version = 11 : i64} {
  func.func @_conv1x1_sigmoid_kernel(%arg0: i32, %arg1: i32, %arg2: memref<1x32x128xf32, #tpu.memory_space<vmem>>, %arg3: memref<8x32xf32, #tpu.memory_space<vmem>>, %arg4: memref<8x1xf32, #tpu.memory_space<vmem>>, %arg5: memref<1x8x128xf32, #tpu.memory_space<vmem>>) attributes {dimension_semantics = [#tpu.dimension_semantics<parallel>, #tpu.dimension_semantics<parallel>], iteration_bounds = array<i64: 2, 2>, scalar_prefetch = 0 : i64, scratch_operands = 0 : i64, tpu.core_type = #tpu.core_type<tc>, window_params = [{transform_indices = @transform_0, window_bounds = array<i64: 1, 32, 128>}, {pipeline_mode = #tpu.pipeline_mode<synchronous>, transform_indices = @transform_1, window_bounds = array<i64: 8, 32>}, {pipeline_mode = #tpu.pipeline_mode<synchronous>, transform_indices = @transform_2, window_bounds = array<i64: 8, 1>}, {transform_indices = @transform_3, window_bounds = array<i64: 1, 8, 128>}]} {
    %c0 = arith.constant 0 : index
    %c0_0 = arith.constant 0 : index
    %c0_1 = arith.constant 0 : index
    %0 = vector.load %arg2[%c0, %c0_0, %c0_1] : memref<1x32x128xf32, #tpu.memory_space<vmem>>, vector<1x32x128xf32>
    %1 = vector.shape_cast %0 : vector<1x32x128xf32> to vector<32x128xf32>
    %c0_2 = arith.constant 0 : index
    %c0_3 = arith.constant 0 : index
    %2 = vector.load %arg3[%c0_2, %c0_3] : memref<8x32xf32, #tpu.memory_space<vmem>>, vector<8x32xf32>
    %cst = arith.constant dense<0.000000e+00> : vector<8x128xf32>
    %3 = tpu.matmul %2, %1, %cst {dimension_numbers = #tpu.dot_dimension_numbers<[1], [0], [0], [1], [0, 0, 1, 1], [], []>} : vector<8x32xf32>, vector<32x128xf32>, vector<8x128xf32> -> vector<8x128xf32>
    %c0_4 = arith.constant 0 : index
    %c0_5 = arith.constant 0 : index
    %4 = vector.load %arg4[%c0_4, %c0_5] : memref<8x1xf32, #tpu.memory_space<vmem>>, vector<8x1xf32>
    %5 = vector.broadcast %4 : vector<8x1xf32> to vector<8x128xf32>
    %6 = arith.addf %3, %5 : vector<8x128xf32>
    %cst_6 = arith.constant 0.000000e+00 : f32
    %7 = vector.broadcast %cst_6 : f32 to vector<8x128xf32>
    %8 = arith.subf %7, %6 : vector<8x128xf32>
    %9 = math.exp %8 : vector<8x128xf32>
    %cst_7 = arith.constant 1.000000e+00 : f32
    %10 = vector.broadcast %cst_7 : f32 to vector<8x128xf32>
    %11 = arith.addf %10, %9 : vector<8x128xf32>
    %cst_8 = arith.constant 1.000000e+00 : f32
    %12 = vector.broadcast %cst_8 : f32 to vector<8x128xf32>
    %13 = arith.divf %12, %11 : vector<8x128xf32>
    %c0_9 = arith.constant 0 : index
    %c0_10 = arith.constant 0 : index
    %c0_11 = arith.constant 0 : index
    %14 = vector.load %arg5[%c0_9, %c0_10, %c0_11] : memref<1x8x128xf32, #tpu.memory_space<vmem>>, vector<1x8x128xf32>
    %15 = vector.shape_cast %14 : vector<1x8x128xf32> to vector<8x128xf32>
    %16 = vector.shape_cast %13 : vector<8x128xf32> to vector<1x8x128xf32>
    tpu.vector_store %arg5[%c0_9, %c0_10, %c0_11], %16 {strides = array<i32>} : memref<1x8x128xf32, #tpu.memory_space<vmem>>, vector<1x8x128xf32>,
    return
  }
  func.func @transform_0(%arg0: i32, %arg1: i32) -> (i32, i32, i32) {
    %c0_i32 = arith.constant 0 : i32
    %c0_i32_0 = arith.constant 0 : i32
    return %arg0, %c0_i32, %arg1 : i32, i32, i32
  }
  func.func @transform_1(%arg0: i32, %arg1: i32) -> (i32, i32) {
    %c0_i32 = arith.constant 0 : i32
    %c0_i32_0 = arith.constant 0 : i32
    %c0_i32_1 = arith.constant 0 : i32
    return %c0_i32, %c0_i32_0 : i32, i32
  }
  func.func @transform_2(%arg0: i32, %arg1: i32) -> (i32, i32) {
    %c0_i32 = arith.constant 0 : i32
    %c0_i32_0 = arith.constant 0 : i32
    %c0_i32_1 = arith.constant 0 : i32
    return %c0_i32, %c0_i32_0 : i32, i32
  }
  func.func @transform_3(%arg0: i32, %arg1: i32) -> (i32, i32, i32) {
    %c0_i32 = arith.constant 0 : i32
    %c0_i32_0 = arith.constant 0 : i32
    return %arg0, %c0_i32, %arg1 : i32, i32, i32
  }
}

</mosaic_0001>

<bundles_post_ra>
// kernel: tpu_custom_call.1
= control target key start
LH: loop header
LB: loop body
LE: loop exit
PB: predicated region body
PF: predicated region fallthrough
CT: control target
= control target key end

     0   :  { %8 = vsyncpa [#allocation3], 0  ;;  %s772_s0 = inlined_call_operand.hbm [shape: f32[2,32,256], index: 0, kind: input, shape index: {}]   ;;  %s773_s1 = inlined_call_operand.vmem [shape: f32[8,32], index: 1, kind: input, shape index: {}]   ;;  %s774_s2 = inlined_call_operand.vmem [shape: f32[8,1], index: 2, kind: input, shape index: {}]   ;;  %s775_s3 = inlined_call_operand.hbm [shape: f32[2,8,256], index: 3, kind: output, shape index: {}]  }
   0x1   :  { %10 = vsyncpa [#allocation3 + $0x1], 0 }
   0x2   :  { %11 = vsyncpa [#allocation4], 0 }
   0x3   :  { %13 = vsyncpa [#allocation4 + $0x1], 0  ;;  %s623_s12 = smov 0   ;;  %s625_s13 = smov 0  }
   0x4   :  { %s627_s14 = smov 0   ;;  %s629_s15 = smov 0  }
   0x5   :  { %s631_s16 = smov 0   ;;  %s633_s17 = smov 0  }
   0x6   :  { %s635_s18 = smov 0   ;;  %s637_s19 = smov 0  }
   0x7 LB: > { %s366_s20 = sadd.s32 4294967295, %s597_s19   ;;  %s367_s21 = sadd.s32 4294967294, %s597_s19   ;;  %s597_s19 = sphi %s637_s19, %s19_s19   ;;  %s593_s18 = sphi %s635_s18, %s794_s18   ;;  %s589_s17 = sphi %s633_s17, %s793_s17   ;;  %s585_s16 = sphi %s631_s16, %s792_s16   ;;  %s581_s15 = sphi %s629_s15, %s791_s15   ;;  %s577_s14 = sphi %s627_s14, %s790_s14   ;;  %s573_s13 = sphi %s625_s13, %s789_s13   ;;  %s569_s12 = sphi %s623_s12, %s788_s12  }
   0x8   : > { %s28_s22 = sadd.s32 1, %s589_s17  ;;  %s31_s23 = sadd.s32 1, %s593_s18 }
   0x9   : > { %p29_p0 = scmp.ge.s32.totalorder %s28_s22, 2  ;;  %s40_s24 = sadd.s32 1, %s577_s14 }
   0xa   : > { %p47_p1 = scmp.ne.s32.totalorder %s577_s14, %s573_s13  ;;  %p48_p2 = scmp.eq.s32.totalorder %s597_s19, 0 }
   0xb   : > { %s796_s22 = smov (%p29_p0, %s28_s22), 0  ;;  %s798_s23 = smov (!%p29_p0, %s31_s23), %s593_s18 }
   0xc   : > { %778 = sst [smem:[#allocation8_spill]] %s796_s22  ;;  %s36_s25 = ssub.s32 %s589_s17, %s796_s22 }
   0xd   : > { %p676_p3 = por %p48_p2, %p47_p1  ;;  %p33_p4 = scmp.ge.s32.totalorder %s798_s23, 2 }
   0xe   : > { %p53_p5 = scmp.ne.s32.totalorder %s573_s13, %s569_s12  ;;  %p54_p6 = scmp.eq.s32.totalorder %s366_s20, 0 }
   0xf   : > { %p121_p7 = scmp.eq.s32.totalorder %s366_s20, 3  ;;  %s800_s23 = smov (%p33_p4, %s798_s23), 0 }
  0x10   : > { %780 = sst [smem:[#allocation9_spill]] %s800_s23  ;;  %p684_p8 = por %p54_p6, %p53_p5 }
  0x11   : > { %p688_p9 = por %p121_p7, %p47_p1  ;;  %s35_s29 = ssub.s32 %s593_s18, %s800_s23 }
  0x12   : > { %p127_p10 = scmp.eq.s32.totalorder %s367_s21, 3  ;;  %s37_s30 = sor.u32 %s36_s25, %s35_s29 }
  0x13   : > { %p38_p11 = scmp.eq.s32.totalorder %s37_s30, 0  ;;  %p394_p13 = scmp.lt.s32.totalorder %s597_s19, 4 }
  0x14   : > { %p694_p12 = por %p127_p10, %p53_p5  ;;  %s153_s5 = sand.u32 1, %s577_s14  }
  0x15   : > { %s701_s6 = scalar_select %p38_p11, %s577_s14, %s40_s24  }
  0x16   : > { %s370_s7 = sshll.u32 %s153_s5, 5  ;;  %s371_s8 = sshll.u32 %s593_s18, 3 }
  0x17   : > { %784 = sst [smem:[#allocation10_spill]] %s701_s6  ;;  %s161_s9 = sadd.s32 %s589_s17, %s371_s8 }
  0x18   : > { %s157_s10 = scalar_lea.vmem [#allocation2], %s370_s7  ;;  %s372_s20 = sshll.u32 %s161_s9, 3 }
  0x19   : > { %s166_s11 = sshll.u32 %s157_s10, 4  ;;  %s163_s29 = scalar_lea.hbm %s772_s0, %s372_s20  ;;  %s167_s11 = int_to_ptr.vmem [resolvable:$true] %s166_s11 }
  0x1a   : > { %p387_p0 = pnand %p394_p13, %p676_p3  ;;  %s164_s30 = sshll.u32 %s163_s29, 4  ;;  %s165_s30 = int_to_ptr.hbm [resolvable:$true] %s164_s30 }
  0x1b   : > { %s154_s23 = scalar_lea.sflag [#allocation3], %s153_s5  ;;  %s599_s24 = smov 256  }
  0x1c   : > { %s600_s22 = smov 128   ;;  %s601_s6 = smov 8  }
  0x1d   : > { %389 = dma.hbm_to_vmem [thread:$0]  (!%p387_p0), %s165_s30, 512, %s167_s11, %s154_s23, %s599_s24, %s600_s22, %s601_s6  }
  0x1e   : > { %p373_p1 = scmp.ge.s32.totalorder %s597_s19, 1  ;;  %p174_p2 = scmp.lt.s32.totalorder %s597_s19, 5 }
  0x20   : > { %p175_p4 = pnand %p373_p1, %p174_p2 }
  0x21   : > { %s713_s7 = sand.u32 (!%p175_p4), 1, %s573_s13  }
  0x22   : > { %178 = sbr.rel (%p175_p4) target bundleno = 209 (0xd1), region = 32  ;;  %s374_s8 = sshll.u32 (!%p175_p4), %s713_s7, 5 }
  0x23   : > { %s181_s26 = scalar_lea.sflag (!%p175_p4), [#allocation3], %s713_s7  ;;  %s184_s9 = scalar_lea.vmem (!%p175_p4), [#allocation2], %s374_s8 }
  0x27   : > { %560 = dma.done.wait (%p684_p8), %s181_s26, 512  }
  0x28   : > { %562 = vsyncadd (%p684_p8), %s181_s26, 4294966784  ;;  %v602_v0 = vmov 0   ;;  %v211_v1 = vld [vmem:[%s184_s9 + $0x18] sm:$0xff]  ;;  %v210_v2 = vld [vmem:[%s184_s9 + $0x10] sm:$0xff]  ;;  %vm219_vm0 = vcmask 261120   ;;  %s378_s27 = sshll.u32 %s585_s16, 1 }
  0x29   : > { %464 = vset.pattern.permute.xlu0 %v602_v0  ;;  %235 = vmatpush.msra.mxu0 %v211_v1  ;;  %v213_v3 = vld [vmem:[%s774_s2] sm:$0xff]  ;;  %v209_v4 = vld [vmem:[%s184_s9 + $0x8] sm:$0xff]  ;;  %s274_s10 = sadd.s32 %s581_s15, %s378_s27  ;;  %s375_s11 = sshll.u32 %s713_s7, 3 }
  0x2a   : > { %216 = vperm.xlu0 %464, %v213_v3   ;;  %v208_v5 = vld [vmem:[%s184_s9] sm:$0xff]  ;;  %s379_s20 = sshll.u32 %s274_s10, 3  ;;  %s207_s30 = scalar_lea.vmem [#allocation5], %s375_s11 }
  0x2b   : > { %236 = vmatpush.msra.mxu0 %v210_v2  ;;  %v212_v6 = vld [vmem:[%s773_s1] sm:$0xff]  ;;  %s276_s29 = scalar_lea.hbm %s775_s3, %s379_s20  ;;  %s278_s24 = sshll.u32 %s207_s30, 4  ;;  %s279_s24 = int_to_ptr.vmem [resolvable:$true] %s278_s24 }
  0x2c   : > { %s280_s8 = sshll.u32 %s276_s29, 4  ;;  %s264_s15 = scalar_lea.sflag [#allocation4], %s713_s7  ;;  %s281_s8 = int_to_ptr.hbm [resolvable:$true] %s280_s8 }
  0x2d   : > { %237 = vmatpush.msra.mxu0 %v209_v4  ;;  %s513_s16 = sshra.s32 %s281_s8, 4  ;;  %s519_s23 = scalar_lea.hbm %s775_s3, 32  ;;  %s514_s16 = int_to_ptr.hbm [resolvable:$true] %s513_s16 }
  0x2e   : > { %s515_s26 = scalar_lea.hbm %s514_s16, 8  ;;  %p520_p7 = scmp.lt.s32.totalorder %s514_s16, %s775_s3 }
  0x2f   : > { %238 = vmatpush.msra.mxu0 %v208_v5  ;;  %p516_p3 = scmp.ne.s32.totalorder %s514_s16, %s515_s26  ;;  %p521_p8 = scmp.lt.s32.totalorder %s519_s23, %s515_s26 }
  0x30   : > { %376 = vmatmul.msk.f32.vlgmr.msra.gmra.mxu0 %vm219_vm0, %v212_v6 }
  0x31   : > { %p517_p5 = pnand %p516_p3, %p688_p9  ;;  %p522_p10 = por %p521_p8, %p520_p7 }
  0x33   : > { %p518_p6 = pneg %p517_p5 }
  0x35   : > { %p523_p11 = pnand %p522_p10, %p518_p6 }
  0x9c   : > { %v217_v7 = vpop.permute.xlu0 %216 }
  0xad   : > { %v240_v8 = vpop.f32.mrf.mxu0 }
  0xae   : > { %v241_v9 = vadd.f32 %v240_v8, %v217_v7 }
  0xb0   : > { %v243_v10 = vsub.f32 0.0, %v241_v9 }
  0xb2   : > { %v244_v11 = vmul.f32 1.442695, %v243_v10 }
  0xb4   : > { %465 = vpow2.f32 %v244_v11 }
  0xba   : > { %v466_v12 = vpop.eup %465 }
  0xbb   : > { %v246_v13 = vadd.f32 1.0, %v466_v12 }
  0xbd   : > { %467 = vrcp.f32 %v246_v13  ;;  %v258_v17 = vand.u32 2147483648, %v246_v13  ;;  %v256_v19 = vand.u32 2147483647, %v246_v13  ;;  %vm252_vm2 = vweird.f32 %v246_v13 }
  0xbf   : > { %v259_v21 = vor.u32 1.1754944e-38, %v258_v17  ;;  %vm257_vm4 = vcmp.eq.f32.partialorder %v256_v19, 8.507059e+37 }
  0xc3   : > { %v468_v14 = vpop.eup %467 }
  0xc4   : > { %v248_v15 = vmul.f32 %v468_v14, %v246_v13  ;;  %vm253_vm1 = vweird.f32 %v468_v14 }
  0xc5   : > { %vm254_vm3 = vmor %vm252_vm2, %vm253_vm1 }
  0xc6   : > { %v249_v16 = vsub.f32 1.0, %v248_v15 }
  0xc8   : > { %v250_v18 = vmul.f32 %v468_v14, %v249_v16 }
  0xca   : > { %v251_v20 = vadd.f32 %v468_v14, %v250_v18 }
  0xcc   : > { %v255_v22 = vsel %vm254_vm3, %v468_v14, %v251_v20 }
  0xcd   : > { %v260_v23 = vsel %vm257_vm4, %v259_v21, %v255_v22 }
  0xce   : > { %262 = vst [vmem:[%s207_s30] sm:$0xff] %v260_v23 }
  0xcf   : > { %526 = shalt.err (!%p523_p11)
}
  0xd0   : > { %384 = dma.vmem_to_hbm [thread:$0]  (%p688_p9), %s279_s24, 128, %s281_s8, %s264_s15  }
  0xd1 PF: > { %p395_p13 = scmp.ge.s32.totalorder %s597_s19, 2  ;;  %s292_s7 = sand.u32 1, %s569_s12  }
  0xd2   : > { %s293_s27 = scalar_lea.sflag [#allocation4], %s292_s7 }
  0xd3   : > { %p391_p0 = pnand %p395_p13, %p694_p12 }
  0xd5   : > { %p392_p1 = pneg %p391_p0 }
  0xd7   : > { %564 = dma.done.wait (%p392_p1), %s293_s27, 128  }
  0xd8   : > { %566 = vsyncadd (%p392_p1), %s293_s27, 4294967168  ;;  %s19_s19 = sadd.s32 1, %s597_s19   ;;  %s785_s10 = sld [smem:[#allocation10_spill]] }
  0xd9   : > { %p16_p2 = scmp.ge.s32.totalorder %s19_s19, 6   ;;  %s786_s28 = sld [smem:[#allocation8_spill]] }
  0xda   : > { %s787_s11 = sld [smem:[#allocation9_spill]]  ;;  %s788_s12 = smov %s573_s13 }
  0xdb   : > { %s789_s13 = smov %s577_s14  ;;  %s791_s15 = smov %s589_s17 }
  0xdc   : > { %s792_s16 = smov %s593_s18  ;;  %18 = sbr.rel (!%p16_p2) target bundleno = 7 (0x7), region = 77 }
  0xde   : > { %s790_s14 = smov %s785_s10 }
  0xdf   : > { %s793_s17 = smov %s786_s28 }
  0xe0   : > { %s794_s18 = smov %s787_s11 }
  0xe1   :  { %299 = vsyncpa [#allocation3], 1 }
  0xe2   :  { %301 = vsyncpa [#allocation3 + $0x1], 1 }
  0xe3   :  { %302 = vsyncpa [#allocation4], 1 }
  0xe4   :  { %304 = vsyncpa [#allocation4 + $0x1], 1 }

</bundles_post_ra>
